<compile_context>
chip_gen: v7x
topology: tpu7x:2x2x1
jax: 0.10.0
libtpu: 0.0.40
codegen_flags: <defaults>
</compile_context>

<pallas_src>
import functools

import jax
import jax.numpy as jnp
from jax.experimental import pallas as pl
from jax.experimental.pallas import tpu as pltpu


@functools.lru_cache(maxsize=1)
def _vmem_cap():
    """Per-core VMEM capacity in bytes (conservative fallback if unknown)."""
    try:
        cap = int(pltpu.get_tpu_info().vmem_capacity_bytes)
        if cap > 0:
            return cap
    except Exception:  # pragma: no cover - defensive, keeps the kernel portable
        pass
    return 64 << 20  # v7x per-TC size: safe lower bound for any generation


def _weight_bytes(C, Cr):
    # W1 + W2 + b1 + b2, double-buffered by the pipeline (worst case).
    return 2 * (2 * C * Cr + Cr + C) * 4


def _fused_double_buffer_bytes(C, HW, eb, Cr):
    img = C * HW * eb
    # 2x in + 2x out blocks, one full-size f32 elementwise temp, weights, slack.
    return 4 * img + C * HW * 4 + _weight_bytes(C, Cr) + (2 << 20)


def _fused_single_buffer_bytes(C, HW, eb, Cr, chunk):
    img = C * HW * eb
    # one image buffer + chunk-sized temps + weights + slack.
    return img + 3 * C * chunk * 4 + _weight_bytes(C, Cr) + (2 << 20)


def _pick_chunk(C, HW):
    """Lane-chunk (multiple of 128) bounding f32 temps to ~2 MiB per chunk."""
    by_vmem = max(128, ((2 << 20) // (4 * C)) // 128 * 128)
    chunk = min(16384, by_vmem)
    if HW >= 128:
        chunk = min(chunk, (HW // 128) * 128)
    return max(128, chunk)


def _block_spec(shape, index_map, buffers=None):
    """BlockSpec with optional N-deep pipelining; falls back if unsupported."""
    if buffers is not None and hasattr(pl, "Buffered"):
        try:
            return pl.BlockSpec(shape, index_map, pipeline_mode=pl.Buffered(buffers))
        except TypeError:
            pass
    return pl.BlockSpec(shape, index_map)


# ---------------------------------------------------------------------------
# Fused path (auto-pipelined, double-buffered): one image per grid step.
# ---------------------------------------------------------------------------
def _ca_fused_kernel(x_ref, w1_ref, b1_ref, w2_ref, b2_ref, o_ref, *, inv_hw):
    """pool -> FC1 -> ReLU -> FC2 -> sigmoid -> scale, all on VPU/XLU."""
    x = x_ref[0]                                                    # (C, HW)
    # Global average pool: accumulate in f32; C stays on the sublane axis.
    pooled = jnp.sum(x.astype(jnp.float32), axis=-1, keepdims=True) * inv_hw   # (C, 1)
    # FC1 (C -> Cr): lane-broadcast pooled over Cr, reduce sublanes (VPU/XLU).
    h = jnp.sum(w1_ref[...] * pooled, axis=0, keepdims=True) + b1_ref[...]     # (1, Cr)
    h = jnp.maximum(h, 0.0)
    # FC2 (Cr -> C): sublane-broadcast h over C, reduce lanes.
    g = jnp.sum(w2_ref[...] * h, axis=-1, keepdims=True) + b2_ref[...]         # (C, 1)
    g = jax.nn.sigmoid(g)
    # Scale: lane-broadcast the (C, 1) gate across the spatial axis.
    # (exact for f32 inputs; for bf16 the gate is rounded once, like autocast)
    o_ref[0] = (x * g.astype(x.dtype)).astype(o_ref.dtype)


def _ca_fused(x, w1, b1, w2, b2):
    B, C, H, W = x.shape
    Cr = w1.shape[1]
    HW = H * W
    eb = x.dtype.itemsize
    xr = x.reshape(B, C, HW)

    cap = _vmem_cap()
    needed = _fused_double_buffer_bytes(C, HW, eb, Cr)
    vmem_limit = int(min(max(needed, 32 << 20), cap - (8 << 20)))

    cost = pl.CostEstimate(
        flops=2 * B * C * HW + 4 * B * C * Cr,
        transcendentals=B * C,
        bytes_accessed=2 * B * C * HW * eb + (2 * C * Cr + Cr + C) * 4,
    )

    out = pl.pallas_call(
        functools.partial(_ca_fused_kernel, inv_hw=1.0 / HW),
        out_shape=jax.ShapeDtypeStruct((B, C, HW), x.dtype),
        grid=(B,),
        in_specs=[
            pl.BlockSpec((1, C, HW), lambda b: (b, 0, 0)),   # x: one image/step
            pl.BlockSpec((C, Cr), lambda b: (0, 0)),         # W1 (C, Cr)
            pl.BlockSpec((1, Cr), lambda b: (0, 0)),         # b1 (1, Cr)
            pl.BlockSpec((C, Cr), lambda b: (0, 0)),         # W2 (C, Cr)
            pl.BlockSpec((C, 1), lambda b: (0, 0)),          # b2 (C, 1)
        ],
        out_specs=pl.BlockSpec((1, C, HW), lambda b: (b, 0, 0)),
        compiler_params=pltpu.CompilerParams(
            dimension_semantics=("parallel",),
            vmem_limit_bytes=vmem_limit,
        ),
        cost_estimate=cost,
    )(xr, w1, b1, w2, b2)
    return out.reshape(B, C, H, W)


# ---------------------------------------------------------------------------
# Fused path, manual single-buffered (x/out in pl.ANY): intermediate regime.
# Still 2x HBM traffic; fits images ~2-4x bigger than the double-buffered
# path before we have to pay the 3x-traffic split.
# ---------------------------------------------------------------------------
def _ca_fused_manual_kernel(x_hbm, w1_ref, b1_ref, w2_ref, b2_ref, o_hbm,
                            buf, sem, *, inv_hw, chunk):
    b = pl.program_id(0)
    C, HW = buf.shape
    n_full = HW // chunk
    rem_start = n_full * chunk

    cp_in = pltpu.make_async_copy(x_hbm.at[b], buf, sem)
    cp_in.start()
    cp_in.wait()

    # ---- global average pool, chunked over lanes to bound f32 temps ----
    pooled = jnp.zeros((C, 1), jnp.float32)

    def pool_body(i, acc):
        s = pl.multiple_of(i * chunk, 128)
        return acc + jnp.sum(buf[:, pl.ds(s, chunk)].astype(jnp.float32),
                             axis=-1, keepdims=True)

    if n_full > 0:
        pooled = jax.lax.fori_loop(0, n_full, pool_body, pooled)
    if rem_start < HW:
        pooled = pooled + jnp.sum(buf[:, rem_start:].astype(jnp.float32),
                                  axis=-1, keepdims=True)
    pooled = pooled * inv_hw                                        # (C, 1)

    # ---- the two tiny FCs on VPU/XLU (no MXU) ----
    h = jnp.sum(w1_ref[...] * pooled, axis=0, keepdims=True) + b1_ref[...]
    h = jnp.maximum(h, 0.0)
    g = jnp.sum(w2_ref[...] * h, axis=-1, keepdims=True) + b2_ref[...]
    g = jax.nn.sigmoid(g).astype(buf.dtype)                         # (C, 1)

    # ---- in-place scale, chunked ----
    def scale_body(i, carry):
        s = pl.multiple_of(i * chunk, 128)
        buf[:, pl.ds(s, chunk)] = buf[:, pl.ds(s, chunk)] * g
        return carry

    if n_full > 0:
        jax.lax.fori_loop(0, n_full, scale_body, 0)
    if rem_start < HW:
        buf[:, rem_start:] = buf[:, rem_start:] * g

    cp_out = pltpu.make_async_copy(buf, o_hbm.at[b], sem)
    cp_out.start()
    cp_out.wait()


def _ca_fused_manual(x, w1, b1, w2, b2):
    B, C, H, W = x.shape
    Cr = w1.shape[1]
    HW = H * W
    eb = x.dtype.itemsize
    xr = x.reshape(B, C, HW)

    chunk = _pick_chunk(C, HW)
    cap = _vmem_cap()
    needed = _fused_single_buffer_bytes(C, HW, eb, Cr, chunk)
    vmem_limit = int(min(max(needed, 32 << 20), cap - (8 << 20)))

    cost = pl.CostEstimate(
        flops=2 * B * C * HW + 4 * B * C * Cr,
        transcendentals=B * C,
        bytes_accessed=2 * B * C * HW * eb + (2 * C * Cr + Cr + C) * 4,
    )

    out = pl.pallas_call(
        functools.partial(_ca_fused_manual_kernel, inv_hw=1.0 / HW, chunk=chunk),
        out_shape=jax.ShapeDtypeStruct((B, C, HW), x.dtype),
        grid=(B,),
        in_specs=[
            pl.BlockSpec(memory_space=pl.ANY),               # x stays in HBM
            pl.BlockSpec((C, Cr), lambda b: (0, 0)),
            pl.BlockSpec((1, Cr), lambda b: (0, 0)),
            pl.BlockSpec((C, Cr), lambda b: (0, 0)),
            pl.BlockSpec((C, 1), lambda b: (0, 0)),
        ],
        out_specs=pl.BlockSpec(memory_space=pl.ANY),         # out written via DMA
        scratch_shapes=[
            pltpu.VMEM((C, HW), x.dtype),
            pltpu.SemaphoreType.DMA,
        ],
        compiler_params=pltpu.CompilerParams(
            dimension_semantics=("parallel",),
            vmem_limit_bytes=vmem_limit,
        ),
        cost_estimate=cost,
    )(xr, w1, b1, w2, b2)
    return out.reshape(B, C, H, W)


# ---------------------------------------------------------------------------
# Split path (3x traffic): gate in XLA, lane-dense tiled Pallas scale pass.
# ---------------------------------------------------------------------------
def _scale_kernel(x_ref, g_ref, o_ref):
    # Pure elementwise; the gate was pre-cast to x.dtype in the wrapper and its
    # t-invariant index_map keeps its block resident across spatial tiles.
    o_ref[...] = (x_ref[...] * g_ref[...]).astype(o_ref.dtype)


def _ca_split(x, w1, b1, w2, b2):
    B, C, H, W = x.shape
    HW = H * W
    eb = x.dtype.itemsize
    cap = _vmem_cap()

    # The "squeeze" + two FCs: negligible FLOPs and bytes, keep in f32.
    pooled = jnp.mean(x.astype(jnp.float32), axis=(2, 3))            # (B, C)
    h = jnp.maximum(pooled @ w1 + b1, 0.0)                           # (B, Cr)
    g = jax.nn.sigmoid(h @ w2.T + b2[:, 0])                          # (B, C)
    g = g.astype(x.dtype).reshape(B, C, 1)                           # cast once here

    xr = x.reshape(B, C, HW)

    # Lane-dense spatial tiles, VMEM-derived, up to 16384 lanes per block so
    # per-grid-step overhead and DMA issue latency are well amortized.
    budget = max(8 << 20, cap - (16 << 20))
    by_vmem = (budget // (5 * C * eb)) // 128 * 128   # up to 3 in + 2 out bufs
    max_tile = max(128, min(16384, by_vmem))
    tile = HW if HW <= max_tile else max_tile
    n_tiles = pl.cdiv(HW, tile)
    # If tiles end up small, deepen the x pipeline to hide DMA latency.
    deep = 3 if (tile <= 2048 and n_tiles >= 4) else None

    vmem_limit = int(min(max(5 * C * tile * eb + (4 << 20), 32 << 20),
                         cap - (8 << 20)))

    cost = pl.CostEstimate(
        flops=2 * B * C * HW,
        transcendentals=B * C,
        bytes_accessed=2 * B * C * HW * eb + B * C * eb,
    )

    out = pl.pallas_call(
        _scale_kernel,
        out_shape=jax.ShapeDtypeStruct((B, C, HW), x.dtype),
        grid=(B, n_tiles),
        in_specs=[
            _block_spec((1, C, tile), lambda b, t: (b, 0, t), buffers=deep),
            pl.BlockSpec((1, C, 1), lambda b, t: (b, 0, 0)),
        ],
        out_specs=pl.BlockSpec((1, C, tile), lambda b, t: (b, 0, t)),
        compiler_params=pltpu.CompilerParams(
            dimension_semantics=("parallel", "parallel"),
            vmem_limit_bytes=vmem_limit,
        ),
        cost_estimate=cost,
    )(xr, g)
    return out.reshape(B, C, H, W)


# ---------------------------------------------------------------------------
# Public entry point with generation-aware routing.
# ---------------------------------------------------------------------------
@jax.jit
def ca_layer(x, w1, b1, w2, b2):
    """CALayer forward.  x: (B, C, H, W).  w1: (C, Cr), b1: (1, Cr),
    w2: (C, Cr) (torch conv2 weight squeezed), b2: (C, 1)."""
    B, C, H, W = x.shape
    Cr = w1.shape[1]
    HW = H * W
    eb = x.dtype.itemsize

    cap = _vmem_cap()
    headroom = cap - (12 << 20)
    img_bytes = C * HW * eb
    chunk = _pick_chunk(C, HW)

    # On small-VMEM parts (v7x-like, 2 TCs) a single large image gives the
    # (B,)-grid fused path no pipelining and only one core; the tiled split
    # path keeps both cores' DMA queues busy.
    if cap <= (64 << 20) and B == 1 and img_bytes > (16 << 20):
        return _ca_split(x, w1, b1, w2, b2)

    if _fused_double_buffer_bytes(C, HW, eb, Cr) <= headroom:
        return _ca_fused(x, w1, b1, w2, b2)            # 2x traffic, pipelined
    if _fused_single_buffer_bytes(C, HW, eb, Cr, chunk) <= headroom:
        return _ca_fused_manual(x, w1, b1, w2, b2)     # 2x traffic, serial DMA
    return _ca_split(x, w1, b1, w2, b2)                # 3x traffic, last resort


def ca_layer_ref(x, w1, b1, w2, b2):
    """Pure-JAX reference mirroring the PyTorch forward."""
    pooled = jnp.mean(x, axis=(2, 3))                        # (B, C)
    h = jnp.maximum(pooled @ w1 + b1, 0.0)                   # (B, Cr)
    g = jax.nn.sigmoid(h @ w2.T + b2[:, 0])                  # (B, C)
    return x * g[:, :, None, None]


if __name__ == "__main__":
    # Small shapes consistent with CALayer(channel=32, reduction=16).
    B, C, H, W = 2, 32, 8, 8
    reduction = 16
    Cr = C // reduction

    key = jax.random.PRNGKey(0)
    kx, kw1, kb1, kw2, kb2 = jax.random.split(key, 5)

    x = jax.random.normal(kx, (B, C, H, W), dtype=jnp.float32)

    # torch weight shapes: conv1 (Cr, C, 1, 1) -> w1 = (C, Cr) (transposed),
    #                      conv2 (C, Cr, 1, 1) -> w2 = (C, Cr) (squeezed).
    w1 = jax.random.normal(kw1, (C, Cr), dtype=jnp.float32) * 0.1
    b1 = jax.random.normal(kb1, (1, Cr), dtype=jnp.float32) * 0.1
    w2 = jax.random.normal(kw2, (C, Cr), dtype=jnp.float32) * 0.1
    b2 = jax.random.normal(kb2, (C, 1), dtype=jnp.float32) * 0.1

    # Routed path (picks the double-buffered fused kernel at these shapes).
    out = jax.block_until_ready(ca_layer(x, w1, b1, w2, b2))
    ref = ca_layer_ref(x, w1, b1, w2, b2)
    assert out.shape == (B, C, H, W)
    assert jnp.allclose(out, ref, atol=1e-5, rtol=1e-5), "fused path mismatch"

    # Exercise the other two code paths directly at small shapes so all
    # regimes are compile- and correctness-validated.
    x2 = jax.random.normal(kx, (2, 32, 16, 16), dtype=jnp.float32)
    ref2 = ca_layer_ref(x2, w1, b1, w2, b2)

    out2 = jax.block_until_ready(jax.jit(_ca_split)(x2, w1, b1, w2, b2))
    assert jnp.allclose(out2, ref2, atol=1e-5, rtol=1e-5), "split path mismatch"

    out3 = jax.block_until_ready(jax.jit(_ca_fused_manual)(x2, w1, b1, w2, b2))
    assert jnp.allclose(out3, ref2, atol=1e-5, rtol=1e-5), "manual path mismatch"

    print("KERNEL_OK")
</pallas_src>

<mosaic_0001>
module attributes {stable_mosaic.version = 11 : i64} {
  func.func @_ca_fused_kernel(%arg0: i32, %arg1: memref<1x32x64xf32, #tpu.memory_space<vmem>>, %arg2: memref<32x2xf32, #tpu.memory_space<vmem>>, %arg3: memref<1x2xf32, #tpu.memory_space<vmem>>, %arg4: memref<32x2xf32, #tpu.memory_space<vmem>>, %arg5: memref<32x1xf32, #tpu.memory_space<vmem>>, %arg6: memref<1x32x64xf32, #tpu.memory_space<vmem>>) attributes {dimension_semantics = [#tpu.dimension_semantics<parallel>], iteration_bounds = array<i64: 2>, scalar_prefetch = 0 : i64, scratch_operands = 0 : i64, tpu.core_type = #tpu.core_type<tc>, window_params = [{transform_indices = @transform_0, window_bounds = array<i64: 1, 32, 64>}, {pipeline_mode = #tpu.pipeline_mode<synchronous>, transform_indices = @transform_1, window_bounds = array<i64: 32, 2>}, {pipeline_mode = #tpu.pipeline_mode<synchronous>, transform_indices = @transform_2, window_bounds = array<i64: 1, 2>}, {pipeline_mode = #tpu.pipeline_mode<synchronous>, transform_indices = @transform_3, window_bounds = array<i64: 32, 2>}, {pipeline_mode = #tpu.pipeline_mode<synchronous>, transform_indices = @transform_4, window_bounds = array<i64: 32, 1>}, {transform_indices = @transform_5, window_bounds = array<i64: 1, 32, 64>}]} {
    %c0 = arith.constant 0 : index
    %c0_0 = arith.constant 0 : index
    %c0_1 = arith.constant 0 : index
    %0 = vector.load %arg1[%c0, %c0_0, %c0_1] : memref<1x32x64xf32, #tpu.memory_space<vmem>>, vector<1x32x64xf32>
    %1 = vector.shape_cast %0 : vector<1x32x64xf32> to vector<32x64xf32>
    %cst = arith.constant dense<0.000000e+00> : vector<32xf32>
    %2 = vector.multi_reduction <add>, %1, %cst [1] : vector<32x64xf32> to vector<32xf32>
    %3 = vector.shape_cast %2 : vector<32xf32> to vector<32x1xf32>
    %cst_2 = arith.constant 1.562500e-02 : f32
    %4 = vector.broadcast %cst_2 : f32 to vector<32x1xf32>
    %5 = arith.mulf %3, %4 : vector<32x1xf32>
    %c0_3 = arith.constant 0 : index
    %c0_4 = arith.constant 0 : index
    %6 = vector.load %arg2[%c0_3, %c0_4] : memref<32x2xf32, #tpu.memory_space<vmem>>, vector<32x2xf32>
    %7 = vector.broadcast %5 : vector<32x1xf32> to vector<32x2xf32>
    %8 = arith.mulf %6, %7 : vector<32x2xf32>
    %cst_5 = arith.constant dense<0.000000e+00> : vector<2xf32>
    %9 = vector.multi_reduction <add>, %8, %cst_5 [0] : vector<32x2xf32> to vector<2xf32>
    %10 = vector.shape_cast %9 : vector<2xf32> to vector<1x2xf32>
    %c0_6 = arith.constant 0 : index
    %c0_7 = arith.constant 0 : index
    %11 = vector.load %arg3[%c0_6, %c0_7] : memref<1x2xf32, #tpu.memory_space<vmem>>, vector<1x2xf32>
    %12 = arith.addf %10, %11 : vector<1x2xf32>
    %cst_8 = arith.constant 0.000000e+00 : f32
    %13 = vector.broadcast %cst_8 : f32 to vector<1x2xf32>
    %14 = arith.maximumf %12, %13 : vector<1x2xf32>
    %c0_9 = arith.constant 0 : index
    %c0_10 = arith.constant 0 : index
    %15 = vector.load %arg4[%c0_9, %c0_10] : memref<32x2xf32, #tpu.memory_space<vmem>>, vector<32x2xf32>
    %16 = vector.broadcast %14 : vector<1x2xf32> to vector<32x2xf32>
    %17 = arith.mulf %15, %16 : vector<32x2xf32>
    %cst_11 = arith.constant dense<0.000000e+00> : vector<32xf32>
    %18 = vector.multi_reduction <add>, %17, %cst_11 [1] : vector<32x2xf32> to vector<32xf32>
    %19 = vector.shape_cast %18 : vector<32xf32> to vector<32x1xf32>
    %c0_12 = arith.constant 0 : index
    %c0_13 = arith.constant 0 : index
    %20 = vector.load %arg5[%c0_12, %c0_13] : memref<32x1xf32, #tpu.memory_space<vmem>>, vector<32x1xf32>
    %21 = arith.addf %19, %20 : vector<32x1xf32>
    %22 = arith.negf %21 : vector<32x1xf32>
    %23 = math.exp %22 : vector<32x1xf32>
    %cst_14 = arith.constant 1.000000e+00 : f32
    %24 = vector.broadcast %cst_14 : f32 to vector<32x1xf32>
    %25 = arith.addf %24, %23 : vector<32x1xf32>
    %26 = arith.divf %24, %25 : vector<32x1xf32>
    %27 = vector.broadcast %26 : vector<32x1xf32> to vector<32x64xf32>
    %28 = arith.mulf %1, %27 : vector<32x64xf32>
    %c0_15 = arith.constant 0 : index
    %c0_16 = arith.constant 0 : index
    %c0_17 = arith.constant 0 : index
    %29 = vector.load %arg6[%c0_15, %c0_16, %c0_17] : memref<1x32x64xf32, #tpu.memory_space<vmem>>, vector<1x32x64xf32>
    %30 = vector.shape_cast %29 : vector<1x32x64xf32> to vector<32x64xf32>
    %31 = vector.shape_cast %28 : vector<32x64xf32> to vector<1x32x64xf32>
    tpu.vector_store %arg6[%c0_15, %c0_16, %c0_17], %31 {strides = array<i32>} : memref<1x32x64xf32, #tpu.memory_space<vmem>>, vector<1x32x64xf32>,
    return
  }
  func.func @transform_0(%arg0: i32) -> (i32, i32, i32) {
    %c0_i32 = arith.constant 0 : i32
    %c0_i32_0 = arith.constant 0 : i32
    %c0_i32_1 = arith.constant 0 : i32
    return %arg0, %c0_i32, %c0_i32_0 : i32, i32, i32
  }
  func.func @transform_1(%arg0: i32) -> (i32, i32) {
    %c0_i32 = arith.constant 0 : i32
    %c0_i32_0 = arith.constant 0 : i32
    %c0_i32_1 = arith.constant 0 : i32
    return %c0_i32, %c0_i32_0 : i32, i32
  }
  func.func @transform_2(%arg0: i32) -> (i32, i32) {
    %c0_i32 = arith.constant 0 : i32
    %c0_i32_0 = arith.constant 0 : i32
    %c0_i32_1 = arith.constant 0 : i32
    return %c0_i32, %c0_i32_0 : i32, i32
  }
  func.func @transform_3(%arg0: i32) -> (i32, i32) {
    %c0_i32 = arith.constant 0 : i32
    %c0_i32_0 = arith.constant 0 : i32
    %c0_i32_1 = arith.constant 0 : i32
    return %c0_i32, %c0_i32_0 : i32, i32
  }
  func.func @transform_4(%arg0: i32) -> (i32, i32) {
    %c0_i32 = arith.constant 0 : i32
    %c0_i32_0 = arith.constant 0 : i32
    %c0_i32_1 = arith.constant 0 : i32
    return %c0_i32, %c0_i32_0 : i32, i32
  }
  func.func @transform_5(%arg0: i32) -> (i32, i32, i32) {
    %c0_i32 = arith.constant 0 : i32
    %c0_i32_0 = arith.constant 0 : i32
    %c0_i32_1 = arith.constant 0 : i32
    return %arg0, %c0_i32, %c0_i32_0 : i32, i32, i32
  }
}

</mosaic_0001>

<bundles_post_ra>
// kernel: ca_layer.1
= control target key start
LH: loop header
LB: loop body
LE: loop exit
PB: predicated region body
PF: predicated region fallthrough
CT: control target
= control target key end

     0   :  { %s493_s18 = smov 0   ;;  %s588_s0 = inlined_call_operand.vmem [shape: f32[2,32,64], index: 0, kind: input, shape index: {}]   ;;  %s589_s1 = inlined_call_operand.vmem [shape: f32[32,2], index: 1, kind: input, shape index: {}]   ;;  %s590_s2 = inlined_call_operand.vmem [shape: f32[1,2], index: 2, kind: input, shape index: {}]   ;;  %s591_s3 = inlined_call_operand.vmem [shape: f32[32,2], index: 3, kind: input, shape index: {}]   ;;  %s592_s4 = inlined_call_operand.vmem [shape: f32[32,1], index: 4, kind: input, shape index: {}]   ;;  %s593_s5 = inlined_call_operand.vmem [shape: f32[2,32,64], index: 5, kind: output, shape index: {}]  }
   0x1 LB: > { %s410_s19 = sadd.s32 4294967295, %s460_s18   ;;  %p414_p0 = scmp.ge.s32.totalorder %s460_s18, 1  ;;  %s460_s18 = sphi %s493_s18, %s15_s18  }
   0x2   : > { %p187_p1 = scmp.lt.s32.totalorder %s460_s18, 3 }
   0x4   : > { %p188_p2 = pnand %p414_p0, %p187_p1 }
   0x5   : > { %p215_p3 = scmp.lt.s32.totalorder (!%p188_p2), %s410_s19, 1  ;;  %vm229_vm0 = vcmask (!%p188_p2), 523264   ;;  %v246_v11 = vld [vmem:[%s589_s1] sm:$0xff] (!%p188_p2)  ;;  %v248_v13 = vld [vmem:[%s589_s1 + $0x10] sm:$0xff] (!%p188_p2)  ;;  %v247_v14 = vld [vmem:[%s589_s1 + $0x8] sm:$0xff] (!%p188_p2)  ;;  %vm254_vm1 = vcmask (!%p188_p2), 15360   ;;  %v275_v34 = vlaneseq (!%p188_p2) }
   0x6   : > { %191 = sbr.rel (%p188_p2) target bundleno = 506 (0x1fa), region = 40  ;;  %v249_v16 = vld [vmem:[%s589_s1 + $0x18] sm:$0xff] (!%p188_p2)  ;;  %v268_v38 = vld [vmem:[%s590_s2] sm:$0x1] (!%p188_p2)  ;;  %v272_v43 = vld [vmem:[%s591_s3 + $0x8] sm:$0xff] (!%p188_p2)  ;;  %v462_v56 = vmov (!%p188_p2), 0  }
   0x7   : > { %v276_v37 = vshrl.u32 (!%p188_p2), %v275_v34, 7  ;;  %v271_v44 = vld [vmem:[%s591_s3] sm:$0xff] (!%p188_p2)  ;;  %v274_v46 = vld [vmem:[%s591_s3 + $0x18] sm:$0xff] (!%p188_p2)  ;;  %v273_v47 = vld [vmem:[%s591_s3 + $0x10] sm:$0xff] (!%p188_p2)  ;;  %437 = vset.pattern.permute.xlu1 (!%p188_p2), %v462_v56  ;;  %436 = vset.pattern.permute.xlu0 (!%p188_p2), %v462_v56 }
   0x8   : > { %v296_v57 = vld [vmem:[%s592_s4 + $0x8] sm:$0xff] (!%p188_p2)  ;;  %v295_v58 = vld [vmem:[%s592_s4] sm:$0xff] (!%p188_p2)  ;;  %v298_v63 = vld [vmem:[%s592_s4 + $0x18] sm:$0xff] (!%p188_p2) }
   0x9   : > { %v277_v41 = vsub.s32 (!%p188_p2), 0, %v276_v37 }
   0xd   : > { %s595_s19 = smov (!%p215_p3, %s410_s19), 1 }
   0xe   : > { %s425_s20 = sshll.u32 %s595_s19, 5 }
   0xf   : > { %s219_s23 = scalar_lea.vmem %s588_s0, %s425_s20  ;;  %s224_s30 = scalar_lea.vmem %s593_s5, %s425_s20 }
  0x10   : > { %v509_v0 = vld [vmem:[%s219_s23] sm:$0xff]  ;;  %v511_v1 = vld [vmem:[%s219_s23 + $0x10] sm:$0xff]  ;;  %v513_v2 = vld [vmem:[%s219_s23 + $0x8] sm:$0xff] }
  0x11   : > { %v230_v3 = vsel %vm229_vm0, %v509_v0, 0.0  ;;  %v236_v4 = vsel %vm229_vm0, %v511_v1, 0.0  ;;  %v519_v5 = vld [vmem:[%s219_s23 + $0x18] sm:$0xff]  ;;  %v233_v6 = vsel %vm229_vm0, %v513_v2, 0.0 }
  0x12   : > { %231 = vadd.xlane.f32.xlu0 %v230_v3  ;;  %237 = vadd.xlane.f32.xlu1 %v236_v4  ;;  %v239_v7 = vsel %vm229_vm0, %v519_v5, 0.0  ;;  %v297_v3 = vld [vmem:[%s592_s4 + $0x10] sm:$0xff] }
  0x16   : > { %234 = vadd.xlane.f32.xlu0 %v233_v6  ;;  %240 = vadd.xlane.f32.xlu1 %v239_v7 }
  0x9f   : > { %v232_v8 = vpop.xlane.xlu0 %231  ;;  %v238_v9 = vpop.xlane.xlu1 %237 }
  0xa0   : > { %v242_v10 = vmul.f32 0.015625, %v232_v8  ;;  %v244_v12 = vmul.f32 0.015625, %v238_v9 }
  0xa2   : > { %v250_v18 = vmul.f32 %v246_v11, %v242_v10  ;;  %v252_v21 = vmul.f32 %v248_v13, %v244_v12 }
  0xa3   : > { %v235_v15 = vpop.xlane.xlu0 %234  ;;  %v241_v17 = vpop.xlane.xlu1 %240 }
  0xa4   : > { %v243_v19 = vmul.f32 0.015625, %v235_v15  ;;  %v245_v20 = vmul.f32 0.015625, %v241_v17  ;;  %v255_v24 = vsel %vm254_vm1, %v250_v18, 0.0  ;;  %v258_v27 = vsel %vm254_vm1, %v252_v21, 0.0 }
  0xa6   : > { %v251_v22 = vmul.f32 %v247_v14, %v243_v19  ;;  %v253_v23 = vmul.f32 %v249_v16, %v245_v20 }
  0xa8   : > { %v256_v25 = vsel %vm254_vm1, %v251_v22, 0.0  ;;  %v260_v28 = vsel %vm254_vm1, %v253_v23, 0.0 }
  0xa9   : > { %v257_v26 = vadd.f32 %v256_v25, %v255_v24 }
  0xab   : > { %v259_v29 = vadd.f32 %v258_v27, %v257_v26 }
  0xad   : > { %v261_v30 = vadd.f32 %v260_v28, %v259_v29 }
  0xaf   : > { %v262_v31 = vrot.slane %v261_v30, 4 }
  0xb1   : > { %v263_v32 = vadd.f32 %v262_v31, %v261_v30 }
  0xb3   : > { %v264_v33 = vrot.slane %v263_v32, 2 }
  0xb5   : > { %v265_v35 = vadd.f32 %v264_v33, %v263_v32 }
  0xb7   : > { %v266_v36 = vrot.slane %v265_v35, 1 }
  0xb9   : > { %v267_v39 = vadd.f32 %v266_v36, %v265_v35 }
  0xbb   : > { %v269_v40 = vadd.f32 %v268_v38, %v267_v39 }
  0xbd   : > { %v270_v42 = vmax.f32 %v269_v40, 0.0 }
  0xbf   : > { %v278_v45 = vrot.slane %v270_v42, %v277_v41 }
  0xc1   : > { %v280_v48 = vmul.f32 %v278_v45, %v272_v43  ;;  %v279_v49 = vmul.f32 %v278_v45, %v271_v44  ;;  %v282_v52 = vmul.f32 %v278_v45, %v274_v46  ;;  %v281_v53 = vmul.f32 %v278_v45, %v273_v47 }
  0xc3   : > { %v286_v50 = vsel %vm254_vm1, %v280_v48, 0.0  ;;  %v283_v51 = vsel %vm254_vm1, %v279_v49, 0.0  ;;  %v292_v54 = vsel %vm254_vm1, %v282_v52, 0.0  ;;  %v289_v55 = vsel %vm254_vm1, %v281_v53, 0.0 }
  0xc4   : > { %287 = vadd.xlane.f32.xlu1 %v286_v50  ;;  %284 = vadd.xlane.f32.xlu0 %v283_v51 }
  0xc8   : > { %293 = vadd.xlane.f32.xlu1 %v292_v54  ;;  %290 = vadd.xlane.f32.xlu0 %v289_v55 }
 0x151   : > { %v288_v59 = vpop.xlane.xlu1 %287  ;;  %v285_v60 = vpop.xlane.xlu0 %284 }
 0x152   : > { %v300_v61 = vadd.f32 %v296_v57, %v288_v59  ;;  %v299_v62 = vadd.f32 %v295_v58, %v285_v60 }
 0x154   : > { %v420_v4 = vmul.f32 -1.442695, %v300_v61  ;;  %v419_v6 = vmul.f32 -1.442695, %v299_v62 }
 0x155   : > { %v294_v7 = vpop.xlane.xlu1 %293  ;;  %v291_v8 = vpop.xlane.xlu0 %290 }
 0x156   : > { %438 = vpow2.f32 %v420_v4  ;;  %v302_v9 = vadd.f32 %v298_v63, %v294_v7  ;;  %v301_v10 = vadd.f32 %v297_v3, %v291_v8 }
 0x157   : > { %440 = vpow2.f32 %v419_v6 }
 0x158   : > { %v422_v11 = vmul.f32 -1.442695, %v302_v9  ;;  %v421_v12 = vmul.f32 -1.442695, %v301_v10 }
 0x15a   : > { %442 = vpow2.f32 %v422_v11 }
 0x15b   : > { %444 = vpow2.f32 %v421_v12 }
 0x160   : > { %v439_v13 = vpop.eup %438 }
 0x161   : > { %v441_v14 = vpop.eup %440  ;;  %v316_v15 = vadd.f32 1.0, %v439_v13 }
 0x162   : > { %v315_v16 = vadd.f32 1.0, %v441_v14 }
 0x163   : > { %446 = vrcp.f32 %v316_v15 }
 0x164   : > { %v443_v17 = vpop.eup %442  ;;  %448 = vrcp.f32 %v315_v16 }
 0x165   : > { %v445_v18 = vpop.eup %444  ;;  %v318_v20 = vadd.f32 1.0, %v443_v17 }
 0x166   : > { %v317_v19 = vadd.f32 1.0, %v445_v18 }
 0x168   : > { %450 = vrcp.f32 %v317_v19 }
 0x169   : > { %452 = vrcp.f32 %v318_v20 }
 0x16d   : > { %v447_v21 = vpop.eup %446 }
 0x16e   : > { %v449_v22 = vpop.eup %448  ;;  %334 = vperm.xlu1 %437, %v447_v21  }
 0x16f   : > { %329 = vperm.xlu0 %436, %v449_v22  }
 0x172   : > { %v451_v23 = vpop.eup %450 }
 0x173   : > { %339 = vperm.xlu1 %437, %v451_v23   ;;  %v453_v24 = vpop.eup %452 }
 0x177   : > { %344 = vperm.xlu1 %437, %v453_v24  }
 0x1ed   : > { %v335_v25 = vpop.permute.xlu1 %334 }
 0x1ee   : > { %v348_v26 = vmul.f32 %v335_v25, %v513_v2  ;;  %v330_v27 = vpop.permute.xlu0 %329 }
 0x1ef   : > { %v347_v28 = vmul.f32 %v330_v27, %v509_v0 }
 0x1f0   : > { %352 = vst.msk [vmem:[%s224_s30 + $0x8] sm:$0xff] %vm229_vm0, %v348_v26 }
 0x1f1   : > { %351 = vst.msk [vmem:[%s224_s30] sm:$0xff] %vm229_vm0, %v347_v28 }
 0x1f2   : > { %v340_v29 = vpop.permute.xlu1 %339 }
 0x1f3   : > { %v349_v30 = vmul.f32 %v340_v29, %v511_v1 }
 0x1f5   : > { %353 = vst.msk [vmem:[%s224_s30 + $0x10] sm:$0xff] %vm229_vm0, %v349_v30 }
 0x1f6   : > { %v345_v31 = vpop.permute.xlu1 %344 }
 0x1f7   : > { %v350_v32 = vmul.f32 %v345_v31, %v519_v5 }
 0x1f9   : > { %354 = vst.msk [vmem:[%s224_s30 + $0x18] sm:$0xff] %vm229_vm0, %v350_v32 }
 0x1fa PF: > { %s15_s18 = sadd.s32 1, %s460_s18  }
 0x1fb   : > { %p12_p4 = scmp.ge.s32.totalorder %s15_s18, 4  }
 0x1fd   :  { %14 = sbr.rel (!%p12_p4) target bundleno = 1 (0x1), region = 70 }

</bundles_post_ra>
